<compile_context>
chip_gen: v7x
topology: tpu7x:2x2x1
jax: 0.10.0
libtpu: 0.0.40
codegen_flags: <defaults>
</compile_context>

<pallas_src>
import jax
import jax.numpy as jnp
from jax.experimental import pallas as pl
from jax.experimental.pallas import tpu as pltpu


_LANE = 128
_SUBLANE = 8
# Above this many table rows the one-hot matmul wastes too many MXU FLOPs
# (2*n_tasks flops per output element) -> switch to the true row-gather path.
_ONEHOT_MAX_TASKS = 512
_DEFAULT_TB = 256  # fills the 256-wide MXU M dimension on v6e/v7x


def _round_up(x, m):
    return ((x + m - 1) // m) * m


def _vmem_capacity_bytes():
    # Per-core VMEM: 128 MiB on v5e/v6e, 64 MiB on v7x. Query when possible,
    # otherwise assume the most conservative (v7x) figure.
    try:
        return int(pltpu.get_tpu_info().vmem_capacity_bytes)
    except Exception:
        return 64 * 1024 * 1024


# --------------------------------------------------------------------------
# Path 1: one-hot MXU matmul (small, float, VMEM-resident table)
# --------------------------------------------------------------------------
def _embed_onehot_kernel(idx_ref, iota_ref, table_ref, out_ref):
    """out[b, :] = table[idx[b], :] via a one-hot matmul on the MXU.

    idx_ref   : (tb, 1) int32          -- this tile's row indices (pipelined).
    iota_ref  : (1, n_tasks_pad) int32 -- column ids, VMEM-resident, loaded once.
    table_ref : (n_tasks_pad, dim_pad) -- full table, VMEM-resident, single buf.
    out_ref   : (tb, dim_pad)
    """
    # onehot[j, t] = 1 iff idx[j] == t; an out-of-range index -> all-zero row.
    onehot = (iota_ref[...] == idx_ref[...]).astype(table_ref.dtype)
    out_ref[...] = jnp.dot(
        onehot, table_ref[...], preferred_element_type=jnp.float32
    ).astype(out_ref.dtype)


def _forward_onehot(idx32, table, *, tb):
    B = idx32.shape[0]
    n_tasks, dim = table.shape
    itemsize = jnp.dtype(table.dtype).itemsize

    # Pad K (contraction dim) to the sublane multiple and dim to a lane multiple
    # so output stores are unmasked, lane-dense vst.  (Padding K further to
    # 128/256 would only matter once the MXU is the binding slot, which the
    # n_tasks crossover already avoids.)
    n_tasks_pad = _round_up(n_tasks, _SUBLANE)
    dim_pad = _round_up(dim, _LANE)

    table_p = table
    if (n_tasks_pad, dim_pad) != (n_tasks, dim):
        table_p = jnp.pad(table, ((0, n_tasks_pad - n_tasks), (0, dim_pad - dim)))

    num_tiles = -(-B // tb)
    b_pad = num_tiles * tb
    if b_pad != B:
        # Pad the tail with index 0 (valid row); padded rows are sliced off.
        idx32 = jnp.pad(idx32, (0, b_pad - B))
    idx_col = idx32.reshape(b_pad, 1)

    iota_row = jnp.arange(n_tasks_pad, dtype=jnp.int32).reshape(1, n_tasks_pad)

    table_bytes = n_tasks_pad * dim_pad * itemsize
    vmem_needed = (
        table_bytes                                        # resident table
        + 2 * tb * dim_pad * itemsize                      # double-buffered out tile
        + 2 * tb * _LANE * 4                               # double-buffered (tb,1) idx
        + _SUBLANE * _round_up(n_tasks_pad, _LANE) * 4     # resident iota row
        + tb * n_tasks_pad * max(itemsize, 4)              # one-hot / spill slack
    )
    vmem_limit = int(
        min(_vmem_capacity_bytes(), max(2 * vmem_needed, 32 * 1024 * 1024))
    )

    cost = pl.CostEstimate(
        flops=2 * b_pad * n_tasks_pad * dim_pad,
        transcendentals=0,
        bytes_accessed=b_pad * dim_pad * itemsize + table_bytes + b_pad * 4,
    )

    out = pl.pallas_call(
        _embed_onehot_kernel,
        out_shape=jax.ShapeDtypeStruct((b_pad, dim_pad), table.dtype),
        grid=(num_tiles,),
        in_specs=[
            # Per-tile column of indices (pipelined).
            pl.BlockSpec((tb, 1), lambda i: (i, 0)),
            # Column-id iota row: VMEM-resident, loaded once, not double-buffered.
            pl.BlockSpec(memory_space=pltpu.MemorySpace.VMEM),
            # Whole (small) table: VMEM-resident, single buffer.
            pl.BlockSpec(memory_space=pltpu.MemorySpace.VMEM),
        ],
        out_specs=pl.BlockSpec((tb, dim_pad), lambda i: (i, 0)),
        compiler_params=pltpu.CompilerParams(
            # Tiles write disjoint output blocks -> megacore sharding on v7x.
            dimension_semantics=("parallel",),
            vmem_limit_bytes=vmem_limit,
        ),
        cost_estimate=cost,
    )(idx_col, iota_row, table_p)

    if b_pad != B or dim_pad != dim:
        out = out[:B, :dim]
    return out


# --------------------------------------------------------------------------
# Path 2: scalar-prefetch data-dependent row gather (large / non-float tables)
# --------------------------------------------------------------------------
def _embed_row_gather_kernel(idx_smem_ref, row_ref, out_ref):
    # idx_smem_ref is consumed by the index_maps; the body is a plain row copy.
    del idx_smem_ref
    out_ref[...] = row_ref[...]


def _forward_row_gather(idx32, table):
    B = idx32.shape[0]
    n_tasks, dim = table.shape
    itemsize = jnp.dtype(table.dtype).itemsize

    dim_pad = _round_up(dim, _LANE)
    table_p = table
    if dim_pad != dim:
        table_p = jnp.pad(table, ((0, 0), (0, dim_pad - dim)))

    # Clamp so the data-dependent DMA can never read out of bounds.
    # (Note: differs from the one-hot path, which yields zeros for OOB indices;
    #  PyTorch nn.Embedding leaves OOB behavior undefined/asserting.)
    idx_clamped = jnp.clip(idx32, 0, n_tasks - 1)

    vmem_limit = int(
        min(_vmem_capacity_bytes(),
            max(32 * dim_pad * itemsize, 16 * 1024 * 1024))
    )

    cost = pl.CostEstimate(
        flops=0,
        transcendentals=0,
        bytes_accessed=2 * B * dim_pad * itemsize + B * 4,
    )

    out = pl.pallas_call(
        _embed_row_gather_kernel,
        out_shape=jax.ShapeDtypeStruct((B, dim_pad), table.dtype),
        grid_spec=pltpu.PrefetchScalarGridSpec(
            num_scalar_prefetch=1,
            grid=(B,),
            in_specs=[
                # Data-dependent row block: only requested rows are DMA'd.
                pl.BlockSpec((1, dim_pad), lambda i, idx_ref: (idx_ref[i], 0)),
            ],
            out_specs=pl.BlockSpec((1, dim_pad), lambda i, idx_ref: (i, 0)),
        ),
        compiler_params=pltpu.CompilerParams(
            dimension_semantics=("arbitrary",),
            vmem_limit_bytes=vmem_limit,
        ),
        cost_estimate=cost,
    )(idx_clamped, table_p)

    if dim_pad != dim:
        out = out[:, :dim]
    return out


# --------------------------------------------------------------------------
# Dispatch wrapper (== Task2Vec.forward)
# --------------------------------------------------------------------------
def task2vec_forward(idx, table, *, tb=_DEFAULT_TB):
    """Pallas equivalent of Task2Vec.forward: out[b, :] = table[idx[b], :]."""
    (B,) = idx.shape
    n_tasks, dim = table.shape
    itemsize = jnp.dtype(table.dtype).itemsize
    idx32 = idx.astype(jnp.int32)

    n_tasks_pad = _round_up(n_tasks, _SUBLANE)
    dim_pad = _round_up(dim, _LANE)
    table_bytes_pad = n_tasks_pad * dim_pad * itemsize
    vmem_cap = _vmem_capacity_bytes()
    resident_budget = vmem_cap // 2  # leave room for output double-buffers etc.

    use_onehot = (
        jnp.issubdtype(table.dtype, jnp.floating)   # MXU path is exact for floats only
        and n_tasks_pad <= _ONEHOT_MAX_TASKS        # below the MXU-bound crossover
        and table_bytes_pad <= resident_budget      # table fits VMEM-resident (v7x: 64 MiB)
    )
    if not use_onehot:
        return _forward_row_gather(idx32, table)

    # Batch tile: big enough to amortize per-step overhead / fill the MXU M dim,
    # small enough not to pad tiny batches 16-32x, and (for v7x) keep >= 2 grid
    # tiles when B is large so both TensorCores get work.
    if B > 128:
        tb_eff = min(tb, _round_up(-(-B // 2), _SUBLANE))
    else:
        tb_eff = _round_up(max(B, 1), _SUBLANE)
    tb_eff = max(_SUBLANE, tb_eff)

    # Shrink tb if the double-buffered output tile would overflow the VMEM budget.
    while tb_eff > _SUBLANE and (
        table_bytes_pad + 2 * tb_eff * dim_pad * itemsize > int(0.8 * vmem_cap)
    ):
        tb_eff = max(_SUBLANE, _round_up(tb_eff // 2, _SUBLANE))

    return _forward_onehot(idx32, table, tb=tb_eff)


if __name__ == "__main__":
    key = jax.random.PRNGKey(0)
    k1, k2, k3, k4, k5, k6 = jax.random.split(key, 6)

    # --- Test 1: module-sized demo (one-hot matmul path, tb shrinks to 8) ---
    n_tasks, dim, batch = 16, 128, 8
    task_vecs = jax.random.normal(k1, (n_tasks, dim), dtype=jnp.float32)
    idx = jax.random.randint(k2, (batch,), 0, n_tasks, dtype=jnp.int32)
    out = jax.block_until_ready(task2vec_forward(idx, task_vecs))
    ref = jnp.take(task_vecs, idx, axis=0)
    assert out.shape == (batch, dim)
    assert jnp.allclose(out, ref), "one-hot path mismatch"

    # --- Test 2: large table -> scalar-prefetch row-gather path ---
    n_tasks2, dim2, batch2 = 1024, 256, 16
    task_vecs2 = jax.random.normal(k3, (n_tasks2, dim2), dtype=jnp.float32)
    idx2 = jax.random.randint(k4, (batch2,), 0, n_tasks2, dtype=jnp.int32)
    out2 = jax.block_until_ready(task2vec_forward(idx2, task_vecs2))
    ref2 = jnp.take(task_vecs2, idx2, axis=0)
    assert out2.shape == (batch2, dim2)
    assert jnp.allclose(out2, ref2), "row-gather path mismatch"

    # --- Test 3: unaligned shapes (dim/n_tasks/batch not tile multiples) ---
    n_tasks3, dim3, batch3 = 12, 72, 5
    task_vecs3 = jax.random.normal(k5, (n_tasks3, dim3), dtype=jnp.float32)
    idx3 = jax.random.randint(k6, (batch3,), 0, n_tasks3, dtype=jnp.int32)
    out3 = jax.block_until_ready(task2vec_forward(idx3, task_vecs3))
    ref3 = jnp.take(task_vecs3, idx3, axis=0)
    assert out3.shape == (batch3, dim3)
    assert jnp.allclose(out3, ref3), "padded-shape path mismatch"

    print("KERNEL_OK")
</pallas_src>

<mosaic_0001>
module attributes {stable_mosaic.version = 11 : i64} {
  func.func @_embed_onehot_kernel(%arg0: i32, %arg1: memref<8x1xi32, #tpu.memory_space<vmem>>, %arg2: memref<1x16xi32, #tpu.memory_space<vmem>>, %arg3: memref<16x128xf32, #tpu.memory_space<vmem>>, %arg4: memref<8x128xf32, #tpu.memory_space<vmem>>) attributes {dimension_semantics = [#tpu.dimension_semantics<parallel>], iteration_bounds = array<i64: 1>, scalar_prefetch = 0 : i64, scratch_operands = 0 : i64, tpu.core_type = #tpu.core_type<tc>, window_params = [{transform_indices = @transform_0, window_bounds = array<i64: 8, 1>}, {pipeline_mode = #tpu.pipeline_mode<synchronous>, transform_indices = @transform_1, window_bounds = array<i64: 1, 16>}, {pipeline_mode = #tpu.pipeline_mode<synchronous>, transform_indices = @transform_2, window_bounds = array<i64: 16, 128>}, {transform_indices = @transform_3, window_bounds = array<i64: 8, 128>}]} {
    %c0 = arith.constant 0 : index
    %c0_0 = arith.constant 0 : index
    %0 = vector.load %arg2[%c0, %c0_0] : memref<1x16xi32, #tpu.memory_space<vmem>>, vector<1x16xi32>
    %c0_1 = arith.constant 0 : index
    %c0_2 = arith.constant 0 : index
    %1 = vector.load %arg1[%c0_1, %c0_2] : memref<8x1xi32, #tpu.memory_space<vmem>>, vector<8x1xi32>
    %2 = vector.broadcast %0 : vector<1x16xi32> to vector<8x16xi32>
    %3 = vector.broadcast %1 : vector<8x1xi32> to vector<8x16xi32>
    %4 = arith.cmpi eq, %2, %3 : vector<8x16xi32>
    %5 = arith.extui %4 : vector<8x16xi1> to vector<8x16xi32>
    %6 = arith.sitofp %5 : vector<8x16xi32> to vector<8x16xf32>
    %c0_3 = arith.constant 0 : index
    %c0_4 = arith.constant 0 : index
    %7 = vector.load %arg3[%c0_3, %c0_4] : memref<16x128xf32, #tpu.memory_space<vmem>>, vector<16x128xf32>
    %cst = arith.constant dense<0.000000e+00> : vector<8x128xf32>
    %8 = tpu.matmul %6, %7, %cst {dimension_numbers = #tpu.dot_dimension_numbers<[1], [0], [0], [1], [0, 0, 1, 1], [], []>} : vector<8x16xf32>, vector<16x128xf32>, vector<8x128xf32> -> vector<8x128xf32>
    %c0_5 = arith.constant 0 : index
    %c0_6 = arith.constant 0 : index
    %9 = vector.load %arg4[%c0_5, %c0_6] : memref<8x128xf32, #tpu.memory_space<vmem>>, vector<8x128xf32>
    tpu.vector_store %arg4[%c0_5, %c0_6], %8 {strides = array<i32>} : memref<8x128xf32, #tpu.memory_space<vmem>>, vector<8x128xf32>,
    return
  }
  func.func @transform_0(%arg0: i32) -> (i32, i32) {
    %c0_i32 = arith.constant 0 : i32
    %c0_i32_0 = arith.constant 0 : i32
    return %arg0, %c0_i32 : i32, i32
  }
  func.func @transform_1(%arg0: i32) -> (i32, i32) {
    %c0_i32 = arith.constant 0 : i32
    %c0_i32_0 = arith.constant 0 : i32
    %c0_i32_1 = arith.constant 0 : i32
    return %c0_i32, %c0_i32_0 : i32, i32
  }
  func.func @transform_2(%arg0: i32) -> (i32, i32) {
    %c0_i32 = arith.constant 0 : i32
    %c0_i32_0 = arith.constant 0 : i32
    %c0_i32_1 = arith.constant 0 : i32
    return %c0_i32, %c0_i32_0 : i32, i32
  }
  func.func @transform_3(%arg0: i32) -> (i32, i32) {
    %c0_i32 = arith.constant 0 : i32
    %c0_i32_0 = arith.constant 0 : i32
    return %arg0, %c0_i32 : i32, i32
  }
}

</mosaic_0001>

<bundles_post_ra>
// kernel: tpu_custom_call.1
= control target key start
LH: loop header
LB: loop body
LE: loop exit
PB: predicated region body
PF: predicated region fallthrough
CT: control target
= control target key end

     0   :  { %8 = vsyncpa [#allocation3], 0  ;;  %s261_s0 = inlined_call_operand.vmem [shape: s32[8,1], index: 0, kind: input, shape index: {}]   ;;  %s262_s1 = inlined_call_operand.hbm [shape: s32[1,16], index: 1, kind: input, shape index: {}]   ;;  %s263_s2 = inlined_call_operand.vmem [shape: f32[16,128], index: 2, kind: input, shape index: {}]   ;;  %s264_s3 = inlined_call_operand.hbm [shape: f32[8,128], index: 3, kind: output, shape index: {}]  }
   0x1   :  { %9 = vsyncpa [#allocation4], 0  ;;  %s202_s12 = smov [#allocation2]   ;;  %s154_s16 = scalar_lea.hbm %s262_s1, 16 }
   0x2   :  { %s18_s13 = sshll.u32 %s202_s12, 4  ;;  %p155_p0 = scmp.ne.s32.totalorder %s262_s1, %s154_s16  ;;  %s19_s13 = int_to_ptr.vmem [resolvable:$true] %s18_s13 }
   0x3   :  { %p158_p1 = scmp.lt.u32.totalorder %s154_s16, %s262_s1 }
   0x5   :  { %p160_p2 = pnand %p158_p1, %p155_p0 }
   0x7   :  { %163 = shalt.err (!%p160_p2)
}
   0x8   :  { %s164_s21 = scalar_lea.vmem %s19_s13, 16  ;;  %s168_s22 = scalar_lea.vmem %s19_s13, 32 }
   0x9   :  { %p165_p3 = scmp.ne.s32.totalorder %s19_s13, %s164_s21  ;;  %p169_p4 = scmp.lt.s32.totalorder %s19_s13, %s19_s13 }
   0xa   :  { %p170_p5 = scmp.lt.s32.totalorder %s168_s22, %s164_s21 }
   0xc   :  { %p171_p6 = por %p170_p5, %p169_p4 }
   0xe   :  { %p172_p7 = pnand %p171_p6, %p165_p3 }
  0x10   :  { %175 = shalt.err (!%p172_p7)
}
  0x11   :  { %21 = dma.hbm_to_vmem [thread:$0]  %s262_s1, 16, %s19_s13, [#allocation3]  }
  0x12   :  { %198 = dma.done.wait [#allocation3], 16  }
  0x13   :  { %199 = vsyncadd [#allocation3], 4294967280  ;;  %v203_v0 = vmov 0   ;;  %v204_v1 = vmov 0.0|0.0   ;;  %v28_v2 = vld [vmem:[%s261_s0] sm:$0xff]  ;;  %v40_v4 = vld [vmem:[%s263_s2 + $0x8] sm:$0xff] }
  0x14   :  { %153 = vset.pattern.permute.xlu0 %v203_v0  ;;  %144 = vmatprep.subr.bf16.mxu0 %v204_v1  ;;  %v39_v3 = vld [vmem:[%s263_s2] sm:$0xff]  ;;  %vm205_vm0 = vmmov 0   ;;  %v206_v6 = vmov 0.0   ;;  %v131_v7 = vld [vmem:[#allocation2] ss:$0 sm:$0xff]  ;;  %vm41_vm1 = vcmask 130048  }
  0x15   :  { %34 = vperm.xlu0 %153, %v28_v2   ;;  %v145_v5 = vpack.c.bf16 %v40_v4, %v39_v3  ;;  %141 = vmatprep.mubr.msk.f32.mxu0 %vm205_vm0, %v206_v6  ;;  %s207_s0 = smov [#allocation5]  }
  0x16   :  { %s122_s1 = sshll.u32 %s207_s0, 4  ;;  %s123_s1 = int_to_ptr.vmem [resolvable:$true] %s122_s1 }
  0x17   :  { %146 = vmatpush3.bf16.msra.mxu0 %v145_v5  ;;  %s176_s4 = scalar_lea.vmem %s123_s1, 128  ;;  %p181_p9 = scmp.lt.s32.totalorder %s123_s1, %s123_s1 }
  0x18   :  { %p177_p8 = scmp.ne.s32.totalorder %s123_s1, %s176_s4  ;;  %p182_p10 = scmp.lt.s32.totalorder %s176_s4, %s176_s4 }
  0x1a   :  { %p183_p11 = por %p182_p10, %p181_p9 }
  0x1c   :  { %p184_p12 = pnand %p183_p11, %p177_p8 }
  0x94   :  { %v35_v8 = vpop.permute.xlu0 %34 }
  0x95   :  { %vm36_vm2 = vcmp.eq.s32.totalorder %v131_v7, %v35_v8 }
  0x96   :  { %v132_v9 = vsel %vm36_vm2, 1.0, %v206_v6 }
  0x97   :  { %142 = vmatmul.mubr.msk.f32.vlgmr.msra.gmra.mrb[0].mxu0 %vm41_vm1, %v132_v9 }
 0x16a   :  { %v111_v10 = vpop.f32.mrb[0].mxu0 }
 0x16b   :  { %115 = vst [vmem:[#allocation5] sm:$0xff] %v111_v10  ;;  %v143_v11 = vpop.f32.mrb[1].mxu0 }
 0x16c   :  { %187 = shalt.err (!%p184_p12)
}
 0x16d   :  { %s188_s6 = scalar_lea.hbm %s264_s3, 128 }
 0x16e   :  { %p189_p13 = scmp.ne.s32.totalorder %s264_s3, %s188_s6  ;;  %p192_p0 = scmp.lt.u32.totalorder %s188_s6, %s264_s3 }
 0x170   :  { %p194_p1 = pnand %p192_p0, %p189_p13 }
 0x172   :  { %197 = shalt.err (!%p194_p1)
}
 0x173   :  { %125 = dma.vmem_to_hbm [thread:$0]  %s123_s1, 128, %s264_s3, [#allocation4]  }
 0x174   :  { %200 = dma.done.wait [#allocation4], 128  }
 0x175   :  { %201 = vsyncadd [#allocation4], 4294967168 }
 0x176   :  { %129 = vsyncpa [#allocation3], 1 }
 0x177   :  { %130 = vsyncpa [#allocation4], 1 }

</bundles_post_ra>
